<compile_context>
chip_gen: v7x
topology: tpu7x:2x2x1
jax: 0.10.0
libtpu: 0.0.40
codegen_flags: <defaults>
</compile_context>

<pallas_src>
import math

import jax
import jax.numpy as jnp
from jax.experimental import pallas as pl
from jax.experimental.pallas import tpu as pltpu

EPS = 1e-5          # PyTorch BatchNorm1d default eps
LANE = 128
SUBLANE = 8


def _round_up(x, m):
    return ((x + m - 1) // m) * m


def _pick_tile(d_pad):
    # Prefer 512/256-wide tiles (v6e/v7x MXU is 2x256^2; keeps stores lane-dense).
    for t in (512, 256, 128):
        if d_pad % t == 0:
            return t
    return d_pad


def _nbytes(shape, dtype):
    return math.prod(shape) * jnp.dtype(dtype).itemsize


# ---------------------------------------------------------------------------
# Stand-in backbone (abstract nn.Module in the torch spec): Conv2d -> ReLU -> flatten.
# Left to XLA per the perf review: at these shapes the conv is an 8x40x128 matmul,
# far below a pallas_call's fixed overhead; lax.conv also scales to real backbones.
# ---------------------------------------------------------------------------
class SimpleConvBackbone:
    def __init__(self, key, in_channels, out_channels=8, k=3, stride=2, pad=1,
                 in_hw=(16, 16)):
        self.k, self.stride, self.pad = k, stride, pad
        self.out_channels = out_channels
        kw, kb = jax.random.split(key)
        fan_in = in_channels * k * k
        self.weight = (jax.random.normal(kw, (out_channels, in_channels, k, k),
                                         jnp.float32) / jnp.sqrt(fan_in))
        self.bias = 0.01 * jax.random.normal(kb, (out_channels,), jnp.float32)
        H, W = in_hw
        self.Ho = (H + 2 * pad - k) // stride + 1
        self.Wo = (W + 2 * pad - k) // stride + 1

    def calculate_backbone_feature_dim(self):
        return self.out_channels * self.Ho * self.Wo

    def __call__(self, image):                          # (B, C, H, W) NCHW
        y = jax.lax.conv_general_dilated(
            image, self.weight, window_strides=(self.stride, self.stride),
            padding=((self.pad, self.pad), (self.pad, self.pad)),
            dimension_numbers=("NCHW", "OIHW", "NCHW"))
        y = jnp.maximum(y + self.bias[None, :, None, None], 0.0)
        return y.reshape(y.shape[0], -1)                # NCHW flatten


# ---------------------------------------------------------------------------
# Fused, dout-tiled CoverNet head kernel
# ---------------------------------------------------------------------------
def _bn_relu(y, p, inv_n):
    """bias + BatchNorm1d (training-mode batch stats, centered two-pass var) + ReLU.
    p rows: 0 = linear bias, 1 = BN gamma, 2 = BN beta (per output-feature column)."""
    y = y + p[0:1, :]
    mean = jnp.sum(y, axis=0, keepdims=True) * inv_n
    yc = y - mean
    var = jnp.sum(yc * yc, axis=0, keepdims=True) * inv_n   # biased, as torch training
    y = yc * jax.lax.rsqrt(var + EPS)
    return jnp.maximum(y * p[1:2, :] + p[2:3, :], 0.0)


def _make_head_kernel(num_layers, batch, asv_dim):
    inv_n = 1.0 / batch   # batch axis is never padded (see module header)

    def kernel(*refs):
        feats_ref, asv_ref, w1_ref, p1_ref, w2_ref, p2_ref = refs[:6]
        extra = refs[6:-2]                 # (w_ref, p_ref) pairs for layers 3..L
        out_ref, acc_ref = refs[-2], refs[-1]
        k = pl.program_id(0)

        @pl.when(k == 0)
        def _init():
            acc_ref[...] = jnp.zeros_like(acc_ref)

        # ---- layer 1, one dout tile: Linear (+asv rank-1 part) -> BN -> ReLU ------
        x16 = feats_ref[...].astype(jnp.bfloat16)
        y = jnp.dot(x16, w1_ref[...], preferred_element_type=jnp.float32)
        p1 = p1_ref[...]
        asv = asv_ref[...]
        for d in range(asv_dim):           # asv part of the first Linear (VPU only)
            y = y + asv[:, d:d + 1] * p1[3 + d:4 + d, :]
        h = _bn_relu(y, p1, inv_n)

        # ---- layer 2 partial product for this tile, accumulated across the grid ---
        acc_ref[...] += jnp.dot(h.astype(jnp.bfloat16), w2_ref[...],
                                preferred_element_type=jnp.float32)

        # ---- last tile: finish layer 2 (+ any remaining layers), emit logits ------
        @pl.when(k == pl.num_programs(0) - 1)
        def _finish():
            h2 = _bn_relu(acc_ref[...], p2_ref[...], inv_n)
            for l in range(num_layers - 2):
                w_ref, p_ref = extra[2 * l], extra[2 * l + 1]
                y_l = jnp.dot(h2.astype(jnp.bfloat16), w_ref[...],
                              preferred_element_type=jnp.float32)
                h2 = _bn_relu(y_l, p_ref[...], inv_n)
            out_ref[...] = h2

    return kernel


class CoverNetPallas:
    """Pallas implementation of CoverNet.forward: concat(backbone(img), asv) then
    repeated [Linear -> BatchNorm1d -> ReLU] (the final layer also gets BN+ReLU,
    exactly as the torch forward() does).  The whole head is ONE pallas_call."""

    def __init__(self, key, backbone, num_modes=64, n_hidden_layers=(4096,), asv_dim=3):
        if not isinstance(n_hidden_layers, (list, tuple)):
            raise ValueError("Param n_hidden_layers must be a list.")
        if len(n_hidden_layers) < 1:
            raise ValueError("Tiled head needs at least one hidden layer.")
        if asv_dim > 5:
            raise ValueError("asv_dim > 5 does not fit the packed (8, dout) slab.")
        self.backbone = backbone
        self.num_modes = num_modes
        self.asv_dim = asv_dim

        feat_dim = backbone.calculate_backbone_feature_dim()
        self.feat_dim = feat_dim
        self.feat_pad = _round_up(feat_dim, LANE)
        dims = [feat_dim + asv_dim] + list(n_hidden_layers) + [num_modes]
        self.num_layers = len(dims) - 1

        # ---- layer 1: feature part -> streamed bf16 tiles; asv part + bias/gamma/
        # beta packed into a single (8, d1_pad) f32 slab.  All padding at init. -----
        d1 = dims[1]
        self.d1_pad = _round_up(d1, LANE)
        self.tile = _pick_tile(self.d1_pad)
        key, kw, kb = jax.random.split(key, 3)
        w1 = jax.random.normal(kw, (dims[0], d1), jnp.float32) / jnp.sqrt(dims[0])
        b1 = 0.01 * jax.random.normal(kb, (d1,), jnp.float32)
        w1f = jnp.zeros((self.feat_pad, self.d1_pad), jnp.float32)
        w1f = w1f.at[:feat_dim, :d1].set(w1[:feat_dim])
        self.w1f = w1f.astype(jnp.bfloat16)
        p1 = jnp.zeros((SUBLANE, self.d1_pad), jnp.float32)
        p1 = p1.at[0, :d1].set(b1)
        p1 = p1.at[1, :d1].set(1.0)                        # BN gamma init
        # row 2: BN beta init = 0 (already zero)
        p1 = p1.at[3:3 + asv_dim, :d1].set(w1[feat_dim:])  # asv rows of the Linear
        self.p1 = p1

        # ---- layers 2..L: padded bf16 weight + packed f32 (8, dout_pad) slab ------
        self.layers = []
        din, din_pad = d1, self.d1_pad
        for dout in dims[2:]:
            dout_pad = _round_up(dout, LANE)
            key, kw, kb = jax.random.split(key, 3)
            w = jax.random.normal(kw, (din, dout), jnp.float32) / jnp.sqrt(din)
            b = 0.01 * jax.random.normal(kb, (dout,), jnp.float32)
            w_pad = jnp.zeros((din_pad, dout_pad), jnp.float32).at[:din, :dout].set(w)
            p_pad = jnp.zeros((SUBLANE, dout_pad), jnp.float32)
            p_pad = p_pad.at[0, :dout].set(b)
            p_pad = p_pad.at[1, :dout].set(1.0)
            self.layers.append((w_pad.astype(jnp.bfloat16), p_pad))
            din, din_pad = dout, dout_pad
        self.d2_pad = self.layers[0][1].shape[1]           # layer-2 dout (accumulated)
        self.out_pad = self.layers[-1][1].shape[1]         # final logits width
        # TODO(synk): nn.Dropout is constructed by the torch module but never invoked
        # in forward(), so it is intentionally omitted here.

    def _head(self, feats, asv):
        B = feats.shape[0]
        kt = self.d1_pad // self.tile
        w2, p2 = self.layers[0]
        extra = self.layers[1:]

        args = [feats, asv, self.w1f, self.p1, w2, p2]
        in_specs = [
            pl.BlockSpec((B, self.feat_pad), lambda k: (0, 0)),        # resident
            pl.BlockSpec((B, self.asv_dim), lambda k: (0, 0)),         # resident
            pl.BlockSpec((self.feat_pad, self.tile), lambda k: (0, k)),  # W1 tile
            pl.BlockSpec((SUBLANE, self.tile), lambda k: (0, k)),        # p1 tile
            pl.BlockSpec((self.tile, self.d2_pad), lambda k: (k, 0)),    # W2 tile
            pl.BlockSpec((SUBLANE, self.d2_pad), lambda k: (0, 0)),      # resident
        ]
        for w, p in extra:
            args.extend([w, p])
            in_specs.append(pl.BlockSpec(w.shape, lambda k: (0, 0)))
            in_specs.append(pl.BlockSpec(p.shape, lambda k: (0, 0)))

        # Explicit VMEM budget: double-buffered streamed tiles + resident blocks.
        streamed = (_nbytes((self.feat_pad, self.tile), jnp.bfloat16)
                    + _nbytes((SUBLANE, self.tile), jnp.float32)
                    + _nbytes((self.tile, self.d2_pad), jnp.bfloat16))
        resident = (_nbytes((B, self.feat_pad), jnp.float32)
                    + _nbytes((B, self.asv_dim), jnp.float32)
                    + _nbytes((SUBLANE, self.d2_pad), jnp.float32)
                    + sum(_nbytes(w.shape, w.dtype) + _nbytes(p.shape, p.dtype)
                          for w, p in extra)
                    + _nbytes((B, self.out_pad), jnp.float32)
                    + _nbytes((B, self.d2_pad), jnp.float32))
        vmem_limit = int(max(16 << 20, 2 * streamed + 2 * resident + (4 << 20)))

        return pl.pallas_call(
            _make_head_kernel(self.num_layers, B, self.asv_dim),
            grid=(kt,),
            in_specs=in_specs,
            out_specs=pl.BlockSpec((B, self.out_pad), lambda k: (0, 0)),
            out_shape=jax.ShapeDtypeStruct((B, self.out_pad), jnp.float32),
            scratch_shapes=[pltpu.VMEM((B, self.d2_pad), jnp.float32)],
            compiler_params=pltpu.CompilerParams(
                # Tile axis is a reduction (layer-2 accumulation + final BN needs the
                # full logits) -> "arbitrary".
                dimension_semantics=("arbitrary",),
                vmem_limit_bytes=vmem_limit),
        )(*args)

    def __call__(self, image, asv):
        feats = self.backbone(image)                        # (B, feat_dim)
        if self.feat_pad != self.feat_dim:                  # no-op for this backbone
            feats = jnp.pad(feats, ((0, 0), (0, self.feat_pad - self.feat_dim)))
        logits_pad = self._head(feats, asv)                 # single fused pallas_call
        return logits_pad[:, :self.num_modes]


if __name__ == "__main__":
    key = jax.random.PRNGKey(0)
    k_bb, k_head, k_img, k_asv = jax.random.split(key, 4)

    B, C, H, W = 2, 4, 16, 16
    asv_dim = 3
    num_modes = 16

    backbone = SimpleConvBackbone(k_bb, in_channels=C, out_channels=8, in_hw=(H, W))
    model = CoverNetPallas(k_head, backbone, num_modes=num_modes,
                           n_hidden_layers=[32], asv_dim=asv_dim)

    image = jax.random.normal(k_img, (B, C, H, W), jnp.float32)
    asv = jax.random.normal(k_asv, (B, asv_dim), jnp.float32)

    fwd = jax.jit(model.__call__)
    logits = fwd(image, asv)
    jax.block_until_ready(logits)
    assert logits.shape == (B, num_modes), logits.shape
    assert bool(jnp.all(jnp.isfinite(logits)))
    print("KERNEL_OK")
</pallas_src>

<mosaic_0001>
module attributes {stable_mosaic.version = 11 : i64} {
  func.func @kernel(%arg0: i32, %arg1: memref<2x512xf32, #tpu.memory_space<vmem>>, %arg2: memref<2x3xf32, #tpu.memory_space<vmem>>, %arg3: memref<512x128xbf16, #tpu.memory_space<vmem>>, %arg4: memref<8x128xf32, #tpu.memory_space<vmem>>, %arg5: memref<128x128xbf16, #tpu.memory_space<vmem>>, %arg6: memref<8x128xf32, #tpu.memory_space<vmem>>, %arg7: memref<2x128xf32, #tpu.memory_space<vmem>>, %arg8: memref<2x128xf32, #tpu.memory_space<vmem>>) attributes {dimension_semantics = [#tpu.dimension_semantics<arbitrary>], iteration_bounds = array<i64: 1>, scalar_prefetch = 0 : i64, scratch_operands = 1 : i64, tpu.core_type = #tpu.core_type<tc>, window_params = [{pipeline_mode = #tpu.pipeline_mode<synchronous>, transform_indices = @transform_0, window_bounds = array<i64: 2, 512>}, {pipeline_mode = #tpu.pipeline_mode<synchronous>, transform_indices = @transform_1, window_bounds = array<i64: 2, 3>}, {transform_indices = @transform_2, window_bounds = array<i64: 512, 128>}, {transform_indices = @transform_3, window_bounds = array<i64: 8, 128>}, {transform_indices = @transform_4, window_bounds = array<i64: 128, 128>}, {pipeline_mode = #tpu.pipeline_mode<synchronous>, transform_indices = @transform_5, window_bounds = array<i64: 8, 128>}, {pipeline_mode = #tpu.pipeline_mode<synchronous>, transform_indices = @transform_6, window_bounds = array<i64: 2, 128>}]} {
    %c0_i32 = arith.constant 0 : i32
    %0 = arith.cmpi eq, %arg0, %c0_i32 : i32
    %1 = arith.extui %0 : i1 to i32
    %c0_i32_0 = arith.constant 0 : i32
    %2 = arith.cmpi ne, %1, %c0_i32_0 : i32
    scf.if %2 {
      %cst_23 = arith.constant 0.000000e+00 : f32
      %63 = vector.broadcast %cst_23 : f32 to vector<2x128xf32>
      %c0_24 = arith.constant 0 : index
      %c0_25 = arith.constant 0 : index
      %64 = vector.load %arg8[%c0_24, %c0_25] : memref<2x128xf32, #tpu.memory_space<vmem>>, vector<2x128xf32>
      tpu.vector_store %arg8[%c0_24, %c0_25], %63 {strides = array<i32>} : memref<2x128xf32, #tpu.memory_space<vmem>>, vector<2x128xf32>,
    } else {
    }
    %c0 = arith.constant 0 : index
    %c0_1 = arith.constant 0 : index
    %3 = vector.load %arg1[%c0, %c0_1] : memref<2x512xf32, #tpu.memory_space<vmem>>, vector<2x512xf32>
    %4 = arith.truncf %3 : vector<2x512xf32> to vector<2x512xbf16>
    %c0_2 = arith.constant 0 : index
    %c0_3 = arith.constant 0 : index
    %5 = vector.load %arg3[%c0_2, %c0_3] : memref<512x128xbf16, #tpu.memory_space<vmem>>, vector<512x128xbf16>
    %cst = arith.constant dense<0.000000e+00> : vector<2x128xf32>
    %6 = tpu.matmul %4, %5, %cst {dimension_numbers = #tpu.dot_dimension_numbers<[1], [0], [0], [1], [0, 0, 1, 1], [], []>} : vector<2x512xbf16>, vector<512x128xbf16>, vector<2x128xf32> -> vector<2x128xf32>
    %c0_4 = arith.constant 0 : index
    %c0_5 = arith.constant 0 : index
    %7 = vector.load %arg4[%c0_4, %c0_5] : memref<8x128xf32, #tpu.memory_space<vmem>>, vector<8x128xf32>
    %c0_6 = arith.constant 0 : index
    %c0_7 = arith.constant 0 : index
    %8 = vector.load %arg2[%c0_6, %c0_7] : memref<2x3xf32, #tpu.memory_space<vmem>>, vector<2x3xf32>
    %9 = vector.extract_strided_slice %8 {offsets = [0, 0], sizes = [2, 1], strides = [1, 1]} : vector<2x3xf32> to vector<2x1xf32>
    %10 = vector.extract_strided_slice %7 {offsets = [3, 0], sizes = [1, 128], strides = [1, 1]} : vector<8x128xf32> to vector<1x128xf32>
    %11 = vector.broadcast %9 : vector<2x1xf32> to vector<2x128xf32>
    %12 = vector.broadcast %10 : vector<1x128xf32> to vector<2x128xf32>
    %13 = arith.mulf %11, %12 : vector<2x128xf32>
    %14 = arith.addf %6, %13 : vector<2x128xf32>
    %15 = vector.extract_strided_slice %8 {offsets = [0, 1], sizes = [2, 1], strides = [1, 1]} : vector<2x3xf32> to vector<2x1xf32>
    %16 = vector.extract_strided_slice %7 {offsets = [4, 0], sizes = [1, 128], strides = [1, 1]} : vector<8x128xf32> to vector<1x128xf32>
    %17 = vector.broadcast %15 : vector<2x1xf32> to vector<2x128xf32>
    %18 = vector.broadcast %16 : vector<1x128xf32> to vector<2x128xf32>
    %19 = arith.mulf %17, %18 : vector<2x128xf32>
    %20 = arith.addf %14, %19 : vector<2x128xf32>
    %21 = vector.extract_strided_slice %8 {offsets = [0, 2], sizes = [2, 1], strides = [1, 1]} : vector<2x3xf32> to vector<2x1xf32>
    %22 = vector.extract_strided_slice %7 {offsets = [5, 0], sizes = [1, 128], strides = [1, 1]} : vector<8x128xf32> to vector<1x128xf32>
    %23 = vector.broadcast %21 : vector<2x1xf32> to vector<2x128xf32>
    %24 = vector.broadcast %22 : vector<1x128xf32> to vector<2x128xf32>
    %25 = arith.mulf %23, %24 : vector<2x128xf32>
    %26 = arith.addf %20, %25 : vector<2x128xf32>
    %27 = vector.extract_strided_slice %7 {offsets = [0, 0], sizes = [1, 128], strides = [1, 1]} : vector<8x128xf32> to vector<1x128xf32>
    %28 = vector.broadcast %27 : vector<1x128xf32> to vector<2x128xf32>
    %29 = arith.addf %26, %28 : vector<2x128xf32>
    %cst_8 = arith.constant dense<0.000000e+00> : vector<128xf32>
    %30 = vector.multi_reduction <add>, %29, %cst_8 [0] : vector<2x128xf32> to vector<128xf32>
    %31 = vector.shape_cast %30 : vector<128xf32> to vector<1x128xf32>
    %cst_9 = arith.constant 5.000000e-01 : f32
    %32 = vector.broadcast %cst_9 : f32 to vector<1x128xf32>
    %33 = arith.mulf %31, %32 : vector<1x128xf32>
    %34 = vector.broadcast %33 : vector<1x128xf32> to vector<2x128xf32>
    %35 = arith.subf %29, %34 : vector<2x128xf32>
    %36 = arith.mulf %35, %35 : vector<2x128xf32>
    %cst_10 = arith.constant dense<0.000000e+00> : vector<128xf32>
    %37 = vector.multi_reduction <add>, %36, %cst_10 [0] : vector<2x128xf32> to vector<128xf32>
    %38 = vector.shape_cast %37 : vector<128xf32> to vector<1x128xf32>
    %cst_11 = arith.constant 5.000000e-01 : f32
    %39 = vector.broadcast %cst_11 : f32 to vector<1x128xf32>
    %40 = arith.mulf %38, %39 : vector<1x128xf32>
    %cst_12 = arith.constant 9.99999974E-6 : f32
    %41 = vector.broadcast %cst_12 : f32 to vector<1x128xf32>
    %42 = arith.addf %40, %41 : vector<1x128xf32>
    %43 = math.rsqrt %42 : vector<1x128xf32>
    %44 = vector.broadcast %43 : vector<1x128xf32> to vector<2x128xf32>
    %45 = arith.mulf %35, %44 : vector<2x128xf32>
    %46 = vector.extract_strided_slice %7 {offsets = [1, 0], sizes = [1, 128], strides = [1, 1]} : vector<8x128xf32> to vector<1x128xf32>
    %47 = vector.broadcast %46 : vector<1x128xf32> to vector<2x128xf32>
    %48 = arith.mulf %45, %47 : vector<2x128xf32>
    %49 = vector.extract_strided_slice %7 {offsets = [2, 0], sizes = [1, 128], strides = [1, 1]} : vector<8x128xf32> to vector<1x128xf32>
    %50 = vector.broadcast %49 : vector<1x128xf32> to vector<2x128xf32>
    %51 = arith.addf %48, %50 : vector<2x128xf32>
    %cst_13 = arith.constant 0.000000e+00 : f32
    %52 = vector.broadcast %cst_13 : f32 to vector<2x128xf32>
    %53 = arith.maximumf %51, %52 : vector<2x128xf32>
    %c0_14 = arith.constant 0 : index
    %c0_15 = arith.constant 0 : index
    %54 = vector.load %arg8[%c0_14, %c0_15] : memref<2x128xf32, #tpu.memory_space<vmem>>, vector<2x128xf32>
    %55 = arith.truncf %53 : vector<2x128xf32> to vector<2x128xbf16>
    %c0_16 = arith.constant 0 : index
    %c0_17 = arith.constant 0 : index
    %56 = vector.load %arg5[%c0_16, %c0_17] : memref<128x128xbf16, #tpu.memory_space<vmem>>, vector<128x128xbf16>
    %cst_18 = arith.constant dense<0.000000e+00> : vector<2x128xf32>
    %57 = tpu.matmul %55, %56, %cst_18 {dimension_numbers = #tpu.dot_dimension_numbers<[1], [0], [0], [1], [0, 0, 1, 1], [], []>} : vector<2x128xbf16>, vector<128x128xbf16>, vector<2x128xf32> -> vector<2x128xf32>
    %58 = arith.addf %54, %57 : vector<2x128xf32>
    %c0_19 = arith.constant 0 : index
    %c0_20 = arith.constant 0 : index
    %59 = vector.load %arg8[%c0_19, %c0_20] : memref<2x128xf32, #tpu.memory_space<vmem>>, vector<2x128xf32>
    tpu.vector_store %arg8[%c0_19, %c0_20], %58 {strides = array<i32>} : memref<2x128xf32, #tpu.memory_space<vmem>>, vector<2x128xf32>,
    %c0_i32_21 = arith.constant 0 : i32
    %60 = arith.cmpi eq, %arg0, %c0_i32_21 : i32
    %61 = arith.extui %60 : i1 to i32
    %c0_i32_22 = arith.constant 0 : i32
    %62 = arith.cmpi ne, %61, %c0_i32_22 : i32
    scf.if %62 {
      %c0_23 = arith.constant 0 : index
      %c0_24 = arith.constant 0 : index
      %63 = vector.load %arg8[%c0_23, %c0_24] : memref<2x128xf32, #tpu.memory_space<vmem>>, vector<2x128xf32>
      %c0_25 = arith.constant 0 : index
      %c0_26 = arith.constant 0 : index
      %64 = vector.load %arg6[%c0_25, %c0_26] : memref<8x128xf32, #tpu.memory_space<vmem>>, vector<8x128xf32>
      %65 = vector.extract_strided_slice %64 {offsets = [0, 0], sizes = [1, 128], strides = [1, 1]} : vector<8x128xf32> to vector<1x128xf32>
      %66 = vector.broadcast %65 : vector<1x128xf32> to vector<2x128xf32>
      %67 = arith.addf %63, %66 : vector<2x128xf32>
      %cst_27 = arith.constant dense<0.000000e+00> : vector<128xf32>
      %68 = vector.multi_reduction <add>, %67, %cst_27 [0] : vector<2x128xf32> to vector<128xf32>
      %69 = vector.shape_cast %68 : vector<128xf32> to vector<1x128xf32>
      %cst_28 = arith.constant 5.000000e-01 : f32
      %70 = vector.broadcast %cst_28 : f32 to vector<1x128xf32>
      %71 = arith.mulf %69, %70 : vector<1x128xf32>
      %72 = vector.broadcast %71 : vector<1x128xf32> to vector<2x128xf32>
      %73 = arith.subf %67, %72 : vector<2x128xf32>
      %74 = arith.mulf %73, %73 : vector<2x128xf32>
      %cst_29 = arith.constant dense<0.000000e+00> : vector<128xf32>
      %75 = vector.multi_reduction <add>, %74, %cst_29 [0] : vector<2x128xf32> to vector<128xf32>
      %76 = vector.shape_cast %75 : vector<128xf32> to vector<1x128xf32>
      %cst_30 = arith.constant 5.000000e-01 : f32
      %77 = vector.broadcast %cst_30 : f32 to vector<1x128xf32>
      %78 = arith.mulf %76, %77 : vector<1x128xf32>
      %cst_31 = arith.constant 9.99999974E-6 : f32
      %79 = vector.broadcast %cst_31 : f32 to vector<1x128xf32>
      %80 = arith.addf %78, %79 : vector<1x128xf32>
      %81 = math.rsqrt %80 : vector<1x128xf32>
      %82 = vector.broadcast %81 : vector<1x128xf32> to vector<2x128xf32>
      %83 = arith.mulf %73, %82 : vector<2x128xf32>
      %84 = vector.extract_strided_slice %64 {offsets = [1, 0], sizes = [1, 128], strides = [1, 1]} : vector<8x128xf32> to vector<1x128xf32>
      %85 = vector.broadcast %84 : vector<1x128xf32> to vector<2x128xf32>
      %86 = arith.mulf %83, %85 : vector<2x128xf32>
      %87 = vector.extract_strided_slice %64 {offsets = [2, 0], sizes = [1, 128], strides = [1, 1]} : vector<8x128xf32> to vector<1x128xf32>
      %88 = vector.broadcast %87 : vector<1x128xf32> to vector<2x128xf32>
      %89 = arith.addf %86, %88 : vector<2x128xf32>
      %cst_32 = arith.constant 0.000000e+00 : f32
      %90 = vector.broadcast %cst_32 : f32 to vector<2x128xf32>
      %91 = arith.maximumf %89, %90 : vector<2x128xf32>
      %c0_33 = arith.constant 0 : index
      %c0_34 = arith.constant 0 : index
      %92 = vector.load %arg7[%c0_33, %c0_34] : memref<2x128xf32, #tpu.memory_space<vmem>>, vector<2x128xf32>
      tpu.vector_store %arg7[%c0_33, %c0_34], %91 {strides = array<i32>} : memref<2x128xf32, #tpu.memory_space<vmem>>, vector<2x128xf32>,
    } else {
    }
    return
  }
  func.func @transform_0(%arg0: i32) -> (i32, i32) {
    %c0_i32 = arith.constant 0 : i32
    %c0_i32_0 = arith.constant 0 : i32
    %c0_i32_1 = arith.constant 0 : i32
    return %c0_i32, %c0_i32_0 : i32, i32
  }
  func.func @transform_1(%arg0: i32) -> (i32, i32) {
    %c0_i32 = arith.constant 0 : i32
    %c0_i32_0 = arith.constant 0 : i32
    %c0_i32_1 = arith.constant 0 : i32
    return %c0_i32, %c0_i32_0 : i32, i32
  }
  func.func @transform_2(%arg0: i32) -> (i32, i32) {
    %c0_i32 = arith.constant 0 : i32
    %c0_i32_0 = arith.constant 0 : i32
    return %c0_i32, %arg0 : i32, i32
  }
  func.func @transform_3(%arg0: i32) -> (i32, i32) {
    %c0_i32 = arith.constant 0 : i32
    %c0_i32_0 = arith.constant 0 : i32
    return %c0_i32, %arg0 : i32, i32
  }
  func.func @transform_4(%arg0: i32) -> (i32, i32) {
    %c0_i32 = arith.constant 0 : i32
    %c0_i32_0 = arith.constant 0 : i32
    return %arg0, %c0_i32 : i32, i32
  }
  func.func @transform_5(%arg0: i32) -> (i32, i32) {
    %c0_i32 = arith.constant 0 : i32
    %c0_i32_0 = arith.constant 0 : i32
    %c0_i32_1 = arith.constant 0 : i32
    return %c0_i32, %c0_i32_0 : i32, i32
  }
  func.func @transform_6(%arg0: i32) -> (i32, i32) {
    %c0_i32 = arith.constant 0 : i32
    %c0_i32_0 = arith.constant 0 : i32
    %c0_i32_1 = arith.constant 0 : i32
    return %c0_i32, %c0_i32_0 : i32, i32
  }
}

</mosaic_0001>

<bundles_post_ra>
// kernel: a_call__.1
= control target key start
LH: loop header
LB: loop body
LE: loop exit
PB: predicated region body
PF: predicated region fallthrough
CT: control target
= control target key end

     0   :  { %v821_v2 = vmov 0   ;;  %v822_v6 = vmov 2   ;;  %v36_v32 = vlaneseq  ;;  %v823_v37 = vmov 1983009808   ;;  %s1022_s0 = inlined_call_operand.vmem [shape: f32[2,512], index: 0, kind: input, shape index: {}]   ;;  %s1023_s1 = inlined_call_operand.vmem [shape: f32[2,3], index: 1, kind: input, shape index: {}]   ;;  %s1024_s2 = inlined_call_operand.vmem [shape: bf16[512,128], index: 2, kind: input, shape index: {}]   ;;  %s1025_s3 = inlined_call_operand.vmem [shape: f32[8,128], index: 3, kind: input, shape index: {}]   ;;  %s1026_s4 = inlined_call_operand.vmem [shape: bf16[128,128], index: 4, kind: input, shape index: {}]   ;;  %s1027_s5 = inlined_call_operand.vmem [shape: f32[8,128], index: 5, kind: input, shape index: {}]   ;;  %s1028_s6 = inlined_call_operand.hbm [shape: f32[2,128], index: 6, kind: output, shape index: {}]  }
   0x1   :  { %v752_v0 = vld [vmem:[%s1024_s2 + $0x40] sm:$0xff]   ;;  %748 = vset.pattern.permute.xlu0 %v821_v2  ;;  %v756_v5 = vld [vmem:[%s1024_s2 + $0x48] sm:$0xff]   ;;  %750 = vset.pattern.permute.xlu1 %v822_v6  ;;  %v760_v10 = vld [vmem:[%s1024_s2 + $0x50] sm:$0xff]   ;;  %v34_v38 = vunpack.c.l.s4 %v823_v37  ;;  %v824_v43 = vmov 1  }
   0x2   :  { %v753_v1 = vld [vmem:[%s1024_s2 + $0xc0] sm:$0xff]   ;;  %668 = vmatprep.subr.bf16.mxu0 %v752_v0  ;;  %v757_v7 = vld [vmem:[%s1024_s2 + $0xc8] sm:$0xff]   ;;  %v761_v11 = vld [vmem:[%s1024_s2 + $0xd0] sm:$0xff]   ;;  %v966_v39 = vshrl.u32 %v36_v32, 7 }
   0x3   :  { %v754_v3 = vld [vmem:[%s1024_s2] sm:$0xff]   ;;  %690 = vmatprep.subr.bf16.mxu1 %v753_v1  ;;  %v758_v8 = vld [vmem:[%s1024_s2 + $0x8] sm:$0xff]   ;;  %v762_v12 = vld [vmem:[%s1024_s2 + $0x10] sm:$0xff]   ;;  %v35_v40 = vunpack.c.0.s8 %v34_v38 }
   0x4   :  { %v755_v4 = vld [vmem:[%s1024_s2 + $0x80] sm:$0xff]   ;;  %669 = vmatpush3.bf16.msra.mxu0 %v754_v3  ;;  %v759_v9 = vld [vmem:[%s1024_s2 + $0x88] sm:$0xff]   ;;  %v763_v13 = vld [vmem:[%s1024_s2 + $0x90] sm:$0xff]  }
   0x5   :  { %691 = vmatpush3.bf16.msra.mxu1 %v755_v4  ;;  %670 = vmatprep.subr.bf16.mxu0 %v756_v5  ;;  %v764_v14 = vld [vmem:[%s1024_s2 + $0x58] sm:$0xff]   ;;  %v768_v18 = vld [vmem:[%s1024_s2 + $0x60] sm:$0xff]   ;;  %v772_v22 = vld [vmem:[%s1024_s2 + $0x68] sm:$0xff]   ;;  %v38_v42 = vsub.s32 %v35_v40, %v966_v39 }
   0x6   :  { %692 = vmatprep.subr.bf16.mxu1 %v757_v7  ;;  %v765_v15 = vld [vmem:[%s1024_s2 + $0xd8] sm:$0xff]   ;;  %v769_v19 = vld [vmem:[%s1024_s2 + $0xe0] sm:$0xff]   ;;  %v773_v23 = vld [vmem:[%s1024_s2 + $0xe8] sm:$0xff]  }
   0x7   :  { %v766_v16 = vld [vmem:[%s1024_s2 + $0x18] sm:$0xff]   ;;  %v770_v20 = vld [vmem:[%s1024_s2 + $0x20] sm:$0xff]   ;;  %v774_v24 = vld [vmem:[%s1024_s2 + $0x28] sm:$0xff]  }
   0x8   :  { %671 = vmatpush3.bf16.msra.mxu0 %v758_v8  ;;  %v767_v17 = vld [vmem:[%s1024_s2 + $0x98] sm:$0xff]   ;;  %v771_v21 = vld [vmem:[%s1024_s2 + $0xa0] sm:$0xff]   ;;  %v775_v25 = vld [vmem:[%s1024_s2 + $0xa8] sm:$0xff]  }
   0x9   :  { %693 = vmatpush3.bf16.msra.mxu1 %v759_v9  ;;  %672 = vmatprep.subr.bf16.mxu0 %v760_v10  ;;  %v776_v26 = vld [vmem:[%s1024_s2 + $0x70] sm:$0xff]   ;;  %v780_v30 = vld [vmem:[%s1024_s2 + $0x78] sm:$0xff]   ;;  %v30_v35 = vld [vmem:[%s1022_s0] sm:$0xff] }
   0xa   :  { %694 = vmatprep.subr.bf16.mxu1 %v761_v11  ;;  %v777_v27 = vld [vmem:[%s1024_s2 + $0xf0] sm:$0xff]   ;;  %v781_v31 = vld [vmem:[%s1024_s2 + $0xf8] sm:$0xff]   ;;  %v122_v36 = vld [vmem:[%s1023_s1] sm:$0x3]  ;;  %v32_v41 = vcombine.high %v30_v35, %v30_v35 }
   0xb   :  { %v778_v28 = vld [vmem:[%s1024_s2 + $0x30] sm:$0xff]   ;;  %v782_v33 = vld [vmem:[%s1024_s2 + $0x38] sm:$0xff]   ;;  %125 = vperm.xlu0 %748, %v122_v36   ;;  %416 = vperm.xlu1 %750, %v122_v36  }
   0xc   :  { %673 = vmatpush3.bf16.msra.mxu0 %v762_v12  ;;  %v779_v29 = vld [vmem:[%s1024_s2 + $0xb0] sm:$0xff]   ;;  %v783_v34 = vld [vmem:[%s1024_s2 + $0xb8] sm:$0xff]  }
   0xd   :  { %695 = vmatpush3.bf16.msra.mxu1 %v763_v13  ;;  %674 = vmatprep.subr.bf16.mxu0 %v764_v14 }
   0xe   :  { %696 = vmatprep.subr.bf16.mxu1 %v765_v15 }
   0xf   :  { %749 = vset.pattern.permute.xlu0 %v824_v43 }
  0x10   :  { %675 = vmatpush3.bf16.msra.mxu0 %v766_v16  ;;  %406 = vperm.xlu0 %749, %v122_v36  }
  0x11   :  { %697 = vmatpush3.bf16.msra.mxu1 %v767_v17  ;;  %676 = vmatprep.subr.bf16.mxu0 %v768_v18 }
  0x12   :  { %698 = vmatprep.subr.bf16.mxu1 %v769_v19 }
  0x14   :  { %677 = vmatpush3.bf16.msra.mxu0 %v770_v20 }
  0x15   :  { %699 = vmatpush3.bf16.msra.mxu1 %v771_v21  ;;  %678 = vmatprep.subr.bf16.mxu0 %v772_v22 }
  0x16   :  { %700 = vmatprep.subr.bf16.mxu1 %v773_v23 }
  0x18   :  { %679 = vmatpush3.bf16.msra.mxu0 %v774_v24 }
  0x19   :  { %701 = vmatpush3.bf16.msra.mxu1 %v775_v25  ;;  %680 = vmatprep.subr.bf16.mxu0 %v776_v26 }
  0x1a   :  { %702 = vmatprep.subr.bf16.mxu1 %v777_v27 }
  0x1c   :  { %681 = vmatpush3.bf16.msra.mxu0 %v778_v28 }
  0x1d   :  { %703 = vmatpush3.bf16.msra.mxu1 %v779_v29  ;;  %682 = vmatprep.subr.bf16.mxu0 %v780_v30 }
  0x1e   :  { %704 = vmatprep.subr.bf16.mxu1 %v781_v31 }
  0x20   :  { %683 = vmatpush3.bf16.msra.mxu0 %v782_v33 }
  0x21   :  { %705 = vmatpush3.bf16.msra.mxu1 %v783_v34 }
  0x22   :  { %11 = vsyncpa [#allocation4], 0  ;;  %v39_v44 = vrot.slane %v30_v35, %v38_v42  ;;  %v46_v45 = vrot.slane %v32_v41, %v38_v42  ;;  %751 = vset.pattern.permute.xlu0 %v822_v6  ;;  %v785_v52 = vld [vmem:[%s1026_s4] sm:$0xff]   ;;  %v825_v53 = vmov 0.0   ;;  %v786_v54 = vld [vmem:[%s1026_s4 + $0x8] sm:$0xff]   ;;  %vm826_vm0 = vmmov 0  }
  0x23   :  { %721 = vmatprep.subr.bf16.mxu0 %v825_v53  ;;  %29 = vst [vmem:[#allocation2] sm:$0x3] %v825_v53  ;;  %v787_v55 = vld [vmem:[%s1026_s4 + $0x10] sm:$0xff]   ;;  %v788_v56 = vld [vmem:[%s1026_s4 + $0x18] sm:$0xff]   ;;  %v789_v57 = vld [vmem:[%s1026_s4 + $0x20] sm:$0xff]   ;;  %v130_v61 = vsub.s32 3, %v966_v39 }
  0x24   :  { %v47_v46 = vcombine.high %v39_v44, %v39_v44  ;;  %v48_v47 = vcombine.high %v46_v45, %v46_v45  ;;  %v53_v48 = vpack.c.bf16 %v39_v44, %v39_v44  ;;  %v55_v49 = vpack.c.bf16 %v46_v45, %v46_v45  ;;  %v790_v58 = vld [vmem:[%s1026_s4 + $0x28] sm:$0xff]   ;;  %v791_v59 = vld [vmem:[%s1026_s4 + $0x30] sm:$0xff]   ;;  %v792_v60 = vld [vmem:[%s1026_s4 + $0x38] sm:$0xff]  }
  0x25   :  { %v121_v63 = vld [vmem:[%s1025_s3] sm:$0xff]  ;;  %v411_v1 = vsub.s32 4, %v966_v39  ;;  %v421_v2 = vsub.s32 5, %v966_v39  ;;  %v427_v20 = vsub.s32 0, %v966_v39  ;;  %vm430_vm1 = vcmask 1041408  }
  0x26   :  { %v54_v50 = vpack.c.bf16 %v47_v46, %v47_v46  ;;  %v56_v51 = vpack.c.bf16 %v48_v47, %v48_v47  ;;  %v131_v0 = vrot.slane %v121_v63, %v130_v61  ;;  %v454_v47 = vsub.s32 1, %v966_v39 }
  0x27   :  { %v412_v8 = vrot.slane %v121_v63, %v411_v1  ;;  %v422_v15 = vrot.slane %v121_v63, %v421_v2  ;;  %v428_v24 = vrot.slane %v121_v63, %v427_v20 }
  0x28   :  { %357 = vmatprep.mubr.bf16.mxu0 %v54_v50  ;;  %397 = vmatprep.mubr.bf16.mxu1 %v56_v51 }
  0x29   :  { %358 = vmatmul.mubr.bf16.vlgmr.msra.gmra.mrb[0].mxu0 %v53_v48  ;;  %398 = vmatmul.mubr.bf16.vlgmr.msra.gmra.mrb[0].mxu1 %v55_v49  ;;  %v459_v48 = vsub.s32 2, %v966_v39  ;;  %v455_v49 = vrot.slane %v121_v63, %v454_v47  ;;  %v575_v39 = vld [vmem:[%s1027_s5] sm:$0xff]  ;;  %s827_s5 = smov [#allocation3]  }
  0x2a   :  { %722 = vmatpush3.bf16.msra.mxu0 %v785_v52  ;;  %737 = vmatprep.mubr.msk.bf16.mxu0 %vm826_vm0, %v825_v53  ;;  %s620_s8 = sshll.u32 %s827_s5, 4  ;;  %s621_s8 = int_to_ptr.vmem [resolvable:$true] %s620_s8 }
  0x2b   :  { %723 = vmatprep.subr.bf16.mxu0 %v825_v53  ;;  %v460_v52 = vrot.slane %v121_v63, %v459_v48  ;;  %s797_s9 = scalar_lea.vmem %s621_s8, 32  ;;  %p802_p1 = scmp.lt.s32.totalorder %s621_s8, %s621_s8 }
  0x2c   :  { %p798_p0 = scmp.ne.s32.totalorder %s621_s8, %s797_s9  ;;  %p803_p2 = scmp.lt.s32.totalorder %s797_s9, %s797_s9 }
  0x2e   :  { %724 = vmatpush3.bf16.msra.mxu0 %v786_v54  ;;  %p804_p3 = por %p803_p2, %p802_p1 }
  0x2f   :  { %725 = vmatprep.subr.bf16.mxu0 %v825_v53 }
  0x30   :  { %p805_p4 = pnand %p804_p3, %p798_p0 }
  0x32   :  { %726 = vmatpush3.bf16.msra.mxu0 %v787_v55 }
  0x33   :  { %727 = vmatprep.subr.bf16.mxu0 %v825_v53 }
  0x36   :  { %728 = vmatpush3.bf16.msra.mxu0 %v788_v56 }
  0x37   :  { %729 = vmatprep.subr.bf16.mxu0 %v825_v53 }
  0x3a   :  { %730 = vmatpush3.bf16.msra.mxu0 %v789_v57  ;;  %v463_v57 = vld [vmem:[#allocation2] sm:$0x3] }
  0x3b   :  { %731 = vmatprep.subr.bf16.mxu0 %v825_v53 }
  0x3e   :  { %732 = vmatpush3.bf16.msra.mxu0 %v790_v58 }
  0x3f   :  { %733 = vmatprep.subr.bf16.mxu0 %v825_v53 }
  0x42   :  { %734 = vmatpush3.bf16.msra.mxu0 %v791_v59 }
  0x43   :  { %735 = vmatprep.subr.bf16.mxu0 %v825_v53 }
  0x46   :  { %736 = vmatpush3.bf16.msra.mxu0 %v792_v60 }
  0x8a   :  { %v126_v62 = vpop.permute.xlu0 %125  ;;  %v417_v4 = vpop.permute.xlu1 %416 }
  0x8b   :  { %v132_v5 = vmul.f32 %v131_v0, %v126_v62  ;;  %v423_v22 = vmul.f32 %v422_v15, %v417_v4  ;;  %v579_v0 = vrot.slane %v575_v39, %v427_v20 }
  0x8f   :  { %v407_v3 = vpop.permute.xlu0 %406 }
  0x90   :  { %v413_v19 = vmul.f32 %v412_v8, %v407_v3 }
  0xfc   :  { %v684_v6 = vpop.f32.mrb[0].mxu0  ;;  %v706_v7 = vpop.f32.mrb[0].mxu1 }
  0xfd   :  { %v685_v9 = vpop.f32.mrb[1].mxu0  ;;  %v707_v10 = vpop.f32.mrb[1].mxu1 }
  0xfe   :  { %v686_v11 = vadd.f32 %v685_v9, %v684_v6  ;;  %v708_v12 = vadd.f32 %v707_v10, %v706_v7  ;;  %v687_v13 = vpop.f32.mrb[2].mxu0  ;;  %v709_v14 = vpop.f32.mrb[2].mxu1 }
  0xff   :  { %v688_v16 = vpop.f32.mrb[3].mxu0  ;;  %v710_v17 = vpop.f32.mrb[3].mxu1 }
 0x100   :  { %v360_v18 = vadd.f32 %v686_v11, %v132_v5 }
 0x102   :  { %v400_v21 = vadd.f32 %v708_v12, %v360_v18 }
 0x104   :  { %v414_v23 = vadd.f32 %v413_v19, %v400_v21  ;;  %v605_v21 = vrot.slane %v575_v39, %v454_v47 }
 0x106   :  { %v424_v25 = vadd.f32 %v423_v22, %v414_v23 }
 0x108   :  { %v429_v26 = vadd.f32 %v428_v24, %v424_v25  ;;  %v610_v24 = vrot.slane %v575_v39, %v459_v48 }
 0x10a   :  { %v431_v27 = vsel %vm430_vm1, %v429_v26, 0.0 }
 0x10b   :  { %v432_v28 = vrot.slane %v431_v27, 4 }
 0x10d   :  { %v433_v29 = vadd.f32 %v432_v28, %v431_v27 }
 0x10f   :  { %v434_v30 = vrot.slane %v433_v29, 2 }
 0x111   :  { %v435_v31 = vadd.f32 %v434_v30, %v433_v29 }
 0x113   :  { %v436_v32 = vrot.slane %v435_v31, 1 }
 0x115   :  { %v437_v33 = vadd.f32 %v436_v32, %v435_v31 }
 0x117   :  { %v438_v34 = vmul.f32 0.5, %v437_v33 }
 0x119   :  { %v439_v35 = vsub.f32 %v429_v26, %v438_v34 }
 0x11b   :  { %v440_v36 = vmul.f32 %v439_v35, %v439_v35 }
 0x11d   :  { %v441_v37 = vsel %vm430_vm1, %v440_v36, 0.0 }
 0x11e   :  { %v442_v38 = vrot.slane %v441_v37, 4 }
 0x120   :  { %v443_v40 = vadd.f32 %v442_v38, %v441_v37 }
 0x122   :  { %v444_v41 = vrot.slane %v443_v40, 2 }
 0x124   :  { %v445_v42 = vadd.f32 %v444_v41, %v443_v40 }
 0x126   :  { %v446_v43 = vrot.slane %v445_v42, 1 }
 0x128   :  { %v447_v44 = vadd.f32 %v446_v43, %v445_v42 }
 0x12a   :  { %v448_v45 = vmul.f32 0.5, %v447_v44 }
 0x12c   :  { %v449_v46 = vadd.f32 1e-05, %v448_v45 }
 0x12e   :  { %793 = vrsqrt.f32 %v449_v46 }
 0x138   :  { %v794_v50 = vpop.eup %793 }
 0x139   :  { %v451_v51 = vmul.f32 %v794_v50, %v439_v35 }
 0x13b   :  { %v456_v53 = vmul.f32 %v455_v49, %v451_v51 }
 0x13d   :  { %v461_v54 = vadd.f32 %v460_v52, %v456_v53 }
 0x13f   :  { %v462_v55 = vmax.f32 %v461_v54, 0.0 }
 0x141   :  { %v464_v56 = vpack.c.bf16 %v462_v55, %v462_v55 }
 0x143   :  { %738 = vmatmul.mubr.bf16.vlgmr.msra.gmra.mrb[4].mxu0 %v464_v56 }
 0x216   :  { %v563_v58 = vpop.f32.mrb[4].mxu0 }
 0x217   :  { %v569_v59 = vadd.f32 %v563_v58, %v463_v57  ;;  %v739_v60 = vpop.f32.mrb[5].mxu0 }
 0x218   :  { %v566_v61 = vpop.f32.mrb[6].mxu0 }
 0x219   :  { %570 = vst [vmem:[#allocation2] sm:$0x3] %v569_v59  ;;  %v740_v62 = vpop.f32.mrb[7].mxu0 }
 0x220   :  { %v574_v1 = vld [vmem:[#allocation2] sm:$0x3] }
 0x221   :  { %v580_v2 = vadd.f32 %v579_v0, %v574_v1 }
 0x223   :  { %v581_v63 = vsel %vm430_vm1, %v580_v2, 0.0 }
 0x224   :  { %v582_v3 = vrot.slane %v581_v63, 4 }
 0x226   :  { %v583_v4 = vadd.f32 %v582_v3, %v581_v63 }
 0x228   :  { %v584_v5 = vrot.slane %v583_v4, 2 }
 0x22a   :  { %v585_v6 = vadd.f32 %v584_v5, %v583_v4 }
 0x22c   :  { %v586_v7 = vrot.slane %v585_v6, 1 }
 0x22e   :  { %v587_v8 = vadd.f32 %v586_v7, %v585_v6 }
 0x230   :  { %v588_v9 = vmul.f32 0.5, %v587_v8 }
 0x232   :  { %v589_v10 = vsub.f32 %v580_v2, %v588_v9 }
 0x234   :  { %v590_v11 = vmul.f32 %v589_v10, %v589_v10 }
 0x236   :  { %v591_v12 = vsel %vm430_vm1, %v590_v11, 0.0 }
 0x237   :  { %v592_v13 = vrot.slane %v591_v12, 4 }
 0x239   :  { %v593_v14 = vadd.f32 %v592_v13, %v591_v12 }
 0x23b   :  { %v594_v15 = vrot.slane %v593_v14, 2 }
 0x23d   :  { %v595_v16 = vadd.f32 %v594_v15, %v593_v14 }
 0x23f   :  { %v596_v17 = vrot.slane %v595_v16, 1 }
 0x241   :  { %v597_v18 = vadd.f32 %v596_v17, %v595_v16 }
 0x243   :  { %v598_v19 = vmul.f32 0.5, %v597_v18 }
 0x245   :  { %v599_v20 = vadd.f32 1e-05, %v598_v19 }
 0x247   :  { %795 = vrsqrt.f32 %v599_v20 }
 0x251   :  { %v796_v22 = vpop.eup %795 }
 0x252   :  { %v601_v23 = vmul.f32 %v796_v22, %v589_v10 }
 0x254   :  { %v606_v25 = vmul.f32 %v605_v21, %v601_v23 }
 0x256   :  { %v611_v26 = vadd.f32 %v610_v24, %v606_v25 }
 0x258   :  { %v612_v27 = vmax.f32 %v611_v26, 0.0 }
 0x25a   :  { %613 = vst [vmem:[#allocation3] sm:$0x3] %v612_v27 }
 0x25b   :  { %808 = shalt.err (!%p805_p4)
}
 0x25c   :  { %s809_s12 = scalar_lea.hbm %s1028_s6, 32 }
 0x25d   :  { %p810_p5 = scmp.ne.s32.totalorder %s1028_s6, %s809_s12  ;;  %p813_p6 = scmp.lt.u32.totalorder %s809_s12, %s1028_s6 }
 0x25f   :  { %p815_p7 = pnand %p813_p6, %p810_p5 }
 0x261   :  { %818 = shalt.err (!%p815_p7)
}
 0x262   :  { %623 = dma.vmem_to_hbm [thread:$0]  %s621_s8, 32, %s1028_s6, [#allocation4]  }
 0x263   :  { %819 = dma.done.wait [#allocation4], 32  }
 0x264   :  { %820 = vsyncadd [#allocation4], 4294967264 }
 0x265   :  { %627 = vsyncpa [#allocation4], 1 }

</bundles_post_ra>
